<compile_context>
chip_gen: v6e
topology: v6e:2x2x1
jax: 0.10.0
libtpu: 0.0.40
codegen_flags: <defaults>
</compile_context>

<pallas_src>
import math

import jax
import jax.numpy as jnp
from jax.experimental import pallas as pl
from jax.experimental.pallas import tpu as pltpu

EMB_DIM = 128
NUM_HEADS = 2
HEAD_DIM = EMB_DIM // NUM_HEADS  # 64


def _cond_embed_kernel(emb_ref, mask_ref, w_in_ref, b_in_ref,
                       w_out_ref, b_out_ref, w_lin_ref, b_lin_ref, out_ref):
    # emb_ref:   (TB, A, 128)  gathered token embeddings (batch tile)
    # mask_ref:  (TB, A, 1)
    # w_in_ref:  (128, 384)    in_proj_weight, pre-transposed
    # b_in_ref:  (1, 384)
    # w_out_ref: (128, 128)    out_proj weight, pre-transposed
    # b_out_ref: (1, 128)
    # w_lin_ref: (A*128, H)    final linear weight, pre-transposed
    # b_lin_ref: (1, H)
    # out_ref:   (TB, H)
    tb, a_dim, e = emb_ref.shape

    x = emb_ref[...] * mask_ref[...]                     # (TB, A, 128)
    x_flat = x.reshape(tb * a_dim, e)                    # merge leading dims

    # --- QKV projection: one 2-D matmul over all batch*attr rows ---
    qkv = jnp.dot(x_flat, w_in_ref[...],
                  preferred_element_type=jnp.float32) + b_in_ref[...]   # (TB*A, 384)
    q = qkv[:, 0 * e:1 * e].reshape(tb, a_dim, e)
    k = qkv[:, 1 * e:2 * e].reshape(tb, a_dim, e)
    v = qkv[:, 2 * e:3 * e].reshape(tb, a_dim, e)

    # --- fold heads into the einsum batch dim: (NUM_HEADS*TB, A, 64) ---
    def heads_to_batch(t):
        return jnp.concatenate(
            [t[..., h * HEAD_DIM:(h + 1) * HEAD_DIM] for h in range(NUM_HEADS)],
            axis=0)

    qh = heads_to_batch(q)
    kh = heads_to_batch(k)
    vh = heads_to_batch(v)

    scale = 1.0 / math.sqrt(HEAD_DIM)
    s = jnp.einsum('bqd,bkd->bqk', qh, kh,
                   preferred_element_type=jnp.float32) * scale          # (2TB, A, A)
    s = s - jnp.max(s, axis=-1, keepdims=True)
    p = jnp.exp(s)
    # EUP approximate reciprocal instead of a VPU divide.
    p = p * pl.reciprocal(jnp.sum(p, axis=-1, keepdims=True), approx=True)
    oh = jnp.einsum('bqk,bkd->bqd', p, vh,
                    preferred_element_type=jnp.float32)                 # (2TB, A, 64)

    # --- concat heads back on lanes, single K=128 out-projection ---
    o = jnp.concatenate(
        [oh[h * tb:(h + 1) * tb] for h in range(NUM_HEADS)], axis=-1)   # (TB, A, 128)
    o_flat = o.reshape(tb * a_dim, e)
    attn = jnp.dot(o_flat, w_out_ref[...],
                   preferred_element_type=jnp.float32) + b_out_ref[...]  # (TB*A, 128)
    attn3 = attn.reshape(tb, a_dim, e)

    # --- lane-dense flatten (TB, A*128) and ONE K=1024 final matmul ---
    flat = jnp.concatenate([attn3[:, a, :] for a in range(a_dim)], axis=-1)  # (TB, A*128)
    out = jnp.dot(flat, w_lin_ref[...],
                  preferred_element_type=jnp.float32) + b_lin_ref[...]       # (TB, H)
    out_ref[...] = out.astype(out_ref.dtype)


def discrete_cond_embedder_forward(attr, mask, params, *, batch_tile=None):
    """attr: (B, attr_dim) int32, mask: (B, attr_dim) {0,1}."""
    num_bins = params['num_bins']
    emb_table = params['emb_table']                       # (attr_dim*num_bins, 128)
    w_in_t, b_in = params['in_proj_weight_t'], params['in_proj_bias']    # (128,384),(1,384)
    w_out_t, b_out = params['out_proj_weight_t'], params['out_proj_bias']  # (128,128),(1,128)
    w_lin_t, b_lin = params['linear_weight_t'], params['linear_bias']    # (A*128,H),(1,H)

    B, A = attr.shape
    H = w_lin_t.shape[1]

    # glue: embedding row-gather (indexing, not compute).
    # TODO(synk): fold this gather into the kernel via scalar-prefetched attr +
    # manual DMA gather from an HBM-resident table (halves HBM traffic at scale).
    offset = (jnp.arange(A, dtype=attr.dtype) * num_bins)[None, :]
    emb = jnp.take(emb_table, attr + offset, axis=0)      # (B, A, 128)

    # batch tile: full batch if small, else a multiple of 8 rows (sublane rule);
    # sized conservatively so intermediates stay well inside v7x's 64 MiB VMEM.
    if batch_tile is None:
        batch_tile = B if B <= 128 else 128
    tb = batch_tile
    if tb != B and tb % 8 != 0:
        tb = max(8, (tb // 8) * 8)
    grid = (pl.cdiv(B, tb),)

    def _resident(shape):
        # weights: whole-array block, always block 0 -> stays VMEM-resident.
        return pl.BlockSpec(shape, lambda i: tuple(0 for _ in shape))

    return pl.pallas_call(
        _cond_embed_kernel,
        out_shape=jax.ShapeDtypeStruct((B, H), jnp.float32),
        grid=grid,
        in_specs=[
            pl.BlockSpec((tb, A, EMB_DIM), lambda i: (i, 0, 0)),
            pl.BlockSpec((tb, A, 1), lambda i: (i, 0, 0)),
            _resident(w_in_t.shape), _resident(b_in.shape),
            _resident(w_out_t.shape), _resident(b_out.shape),
            _resident(w_lin_t.shape), _resident(b_lin.shape),
        ],
        out_specs=pl.BlockSpec((tb, H), lambda i: (i, 0)),
        compiler_params=pltpu.CompilerParams(
            dimension_semantics=("parallel",)),
    )(
        emb.astype(jnp.float32),
        mask.astype(jnp.float32)[..., None],
        w_in_t, b_in, w_out_t, b_out, w_lin_t, b_lin,
    )


def reference_forward(attr, mask, params):
    """Pure-JAX reference mirroring the PyTorch module exactly."""
    num_bins = params['num_bins']
    B, A = attr.shape
    offset = (jnp.arange(A, dtype=attr.dtype) * num_bins)[None, :]
    emb = params['emb_table'][attr + offset]                            # (B, A, 128)
    emb = emb * mask.astype(emb.dtype)[..., None]

    qkv = emb @ params['in_proj_weight_t'] + params['in_proj_bias']
    q, k, v = jnp.split(qkv, 3, axis=-1)

    def split_heads(t):
        return t.reshape(B, A, NUM_HEADS, HEAD_DIM).transpose(0, 2, 1, 3)

    qh, kh, vh = split_heads(q), split_heads(k), split_heads(v)
    s = jnp.einsum('bhqd,bhkd->bhqk', qh, kh) / math.sqrt(HEAD_DIM)
    p = jax.nn.softmax(s, axis=-1)
    o = jnp.einsum('bhqk,bhkd->bhqd', p, vh).transpose(0, 2, 1, 3).reshape(B, A, EMB_DIM)
    o = o @ params['out_proj_weight_t'] + params['out_proj_bias']
    flat = o.reshape(B, A * EMB_DIM)
    return flat @ params['linear_weight_t'] + params['linear_bias']


def make_params(attr_dim, hidden_size, num_bins, key):
    # Weights are stored already transposed (and biases pre-broadcast) in the
    # exact layout the kernel consumes, so the forward wrapper does no per-call
    # transposes.  On v6e/v7x these could be stored bf16.
    ks = jax.random.split(key, 7)
    emb_table = jax.random.normal(ks[0], (attr_dim * num_bins, EMB_DIM), jnp.float32) * 0.02
    w_in = jax.random.normal(ks[1], (3 * EMB_DIM, EMB_DIM), jnp.float32) * 0.05
    b_in = jax.random.normal(ks[2], (3 * EMB_DIM,), jnp.float32) * 0.01
    w_out = jax.random.normal(ks[3], (EMB_DIM, EMB_DIM), jnp.float32) * 0.05
    b_out = jax.random.normal(ks[4], (EMB_DIM,), jnp.float32) * 0.01
    w_lin = jax.random.normal(ks[5], (hidden_size, EMB_DIM * attr_dim), jnp.float32) * 0.02
    b_lin = jax.random.normal(ks[6], (hidden_size,), jnp.float32) * 0.01
    return {
        'num_bins': num_bins,
        'emb_table': emb_table,
        'in_proj_weight_t': w_in.T,          # (128, 384)
        'in_proj_bias': b_in[None, :],       # (1, 384)
        'out_proj_weight_t': w_out.T,        # (128, 128)
        'out_proj_bias': b_out[None, :],     # (1, 128)
        'linear_weight_t': w_lin.T,          # (A*128, H)
        'linear_bias': b_lin[None, :],       # (1, H)
    }


if __name__ == "__main__":
    ATTR_DIM = 8
    HIDDEN = 32
    NUM_BINS = 100
    BATCH = 2

    key = jax.random.PRNGKey(0)
    k_param, k_attr, k_mask = jax.random.split(key, 3)

    params = make_params(ATTR_DIM, HIDDEN, NUM_BINS, k_param)
    attr = jax.random.randint(k_attr, (BATCH, ATTR_DIM), 0, NUM_BINS, dtype=jnp.int32)
    mask = (jax.random.uniform(k_mask, (BATCH, ATTR_DIM)) > 0.3).astype(jnp.float32)

    out = jax.block_until_ready(discrete_cond_embedder_forward(attr, mask, params))
    ref = jax.block_until_ready(reference_forward(attr, mask, params))

    assert out.shape == (BATCH, HIDDEN)
    # slightly relaxed tolerance: softmax denom uses the EUP approx reciprocal.
    err = jnp.max(jnp.abs(out - ref))
    assert jnp.allclose(out, ref, atol=2e-4, rtol=2e-4), f"max abs err {err}"

    print("KERNEL_OK")
</pallas_src>

<mosaic_0001>
module attributes {stable_mosaic.version = 11 : i64} {
  func.func @_cond_embed_kernel(%arg0: i32, %arg1: memref<2x8x128xf32, #tpu.memory_space<vmem>>, %arg2: memref<2x8x1xf32, #tpu.memory_space<vmem>>, %arg3: memref<128x384xf32, #tpu.memory_space<vmem>>, %arg4: memref<1x384xf32, #tpu.memory_space<vmem>>, %arg5: memref<128x128xf32, #tpu.memory_space<vmem>>, %arg6: memref<1x128xf32, #tpu.memory_space<vmem>>, %arg7: memref<1024x32xf32, #tpu.memory_space<vmem>>, %arg8: memref<1x32xf32, #tpu.memory_space<vmem>>, %arg9: memref<2x32xf32, #tpu.memory_space<vmem>>) attributes {dimension_semantics = [#tpu.dimension_semantics<parallel>], iteration_bounds = array<i64: 1>, scalar_prefetch = 0 : i64, scratch_operands = 0 : i64, tpu.core_type = #tpu.core_type<tc>, window_params = [{transform_indices = @transform_0, window_bounds = array<i64: 2, 8, 128>}, {transform_indices = @transform_1, window_bounds = array<i64: 2, 8, 1>}, {pipeline_mode = #tpu.pipeline_mode<synchronous>, transform_indices = @transform_2, window_bounds = array<i64: 128, 384>}, {pipeline_mode = #tpu.pipeline_mode<synchronous>, transform_indices = @transform_3, window_bounds = array<i64: 1, 384>}, {pipeline_mode = #tpu.pipeline_mode<synchronous>, transform_indices = @transform_4, window_bounds = array<i64: 128, 128>}, {pipeline_mode = #tpu.pipeline_mode<synchronous>, transform_indices = @transform_5, window_bounds = array<i64: 1, 128>}, {pipeline_mode = #tpu.pipeline_mode<synchronous>, transform_indices = @transform_6, window_bounds = array<i64: 1024, 32>}, {pipeline_mode = #tpu.pipeline_mode<synchronous>, transform_indices = @transform_7, window_bounds = array<i64: 1, 32>}, {transform_indices = @transform_8, window_bounds = array<i64: 2, 32>}]} {
    %c0 = arith.constant 0 : index
    %c0_0 = arith.constant 0 : index
    %c0_1 = arith.constant 0 : index
    %0 = vector.load %arg1[%c0, %c0_0, %c0_1] : memref<2x8x128xf32, #tpu.memory_space<vmem>>, vector<2x8x128xf32>
    %c0_2 = arith.constant 0 : index
    %c0_3 = arith.constant 0 : index
    %c0_4 = arith.constant 0 : index
    %1 = vector.load %arg2[%c0_2, %c0_3, %c0_4] : memref<2x8x1xf32, #tpu.memory_space<vmem>>, vector<2x8x1xf32>
    %2 = vector.broadcast %1 : vector<2x8x1xf32> to vector<2x8x128xf32>
    %3 = arith.mulf %0, %2 : vector<2x8x128xf32>
    %4 = vector.shape_cast %3 : vector<2x8x128xf32> to vector<16x128xf32>
    %c0_5 = arith.constant 0 : index
    %c0_6 = arith.constant 0 : index
    %5 = vector.load %arg3[%c0_5, %c0_6] : memref<128x384xf32, #tpu.memory_space<vmem>>, vector<128x384xf32>
    %cst = arith.constant dense<0.000000e+00> : vector<16x384xf32>
    %6 = tpu.matmul %4, %5, %cst {dimension_numbers = #tpu.dot_dimension_numbers<[1], [0], [0], [1], [0, 0, 1, 1], [], []>} : vector<16x128xf32>, vector<128x384xf32>, vector<16x384xf32> -> vector<16x384xf32>
    %c0_7 = arith.constant 0 : index
    %c0_8 = arith.constant 0 : index
    %7 = vector.load %arg4[%c0_7, %c0_8] : memref<1x384xf32, #tpu.memory_space<vmem>>, vector<1x384xf32>
    %8 = vector.broadcast %7 : vector<1x384xf32> to vector<16x384xf32>
    %9 = arith.addf %6, %8 : vector<16x384xf32>
    %10 = vector.extract_strided_slice %9 {offsets = [0, 0], sizes = [16, 128], strides = [1, 1]} : vector<16x384xf32> to vector<16x128xf32>
    %11 = vector.shape_cast %10 : vector<16x128xf32> to vector<2x8x128xf32>
    %12 = vector.extract_strided_slice %9 {offsets = [0, 128], sizes = [16, 128], strides = [1, 1]} : vector<16x384xf32> to vector<16x128xf32>
    %13 = vector.shape_cast %12 : vector<16x128xf32> to vector<2x8x128xf32>
    %14 = vector.extract_strided_slice %9 {offsets = [0, 256], sizes = [16, 128], strides = [1, 1]} : vector<16x384xf32> to vector<16x128xf32>
    %15 = vector.shape_cast %14 : vector<16x128xf32> to vector<2x8x128xf32>
    %16 = vector.extract_strided_slice %11 {offsets = [0, 0, 0], sizes = [2, 8, 64], strides = [1, 1, 1]} : vector<2x8x128xf32> to vector<2x8x64xf32>
    %17 = vector.extract_strided_slice %11 {offsets = [0, 0, 64], sizes = [2, 8, 64], strides = [1, 1, 1]} : vector<2x8x128xf32> to vector<2x8x64xf32>
    %18 = tpu.concatenate %16, %17 in 0 : vector<2x8x64xf32>, vector<2x8x64xf32> -> vector<4x8x64xf32>
    %19 = vector.extract_strided_slice %13 {offsets = [0, 0, 0], sizes = [2, 8, 64], strides = [1, 1, 1]} : vector<2x8x128xf32> to vector<2x8x64xf32>
    %20 = vector.extract_strided_slice %13 {offsets = [0, 0, 64], sizes = [2, 8, 64], strides = [1, 1, 1]} : vector<2x8x128xf32> to vector<2x8x64xf32>
    %21 = tpu.concatenate %19, %20 in 0 : vector<2x8x64xf32>, vector<2x8x64xf32> -> vector<4x8x64xf32>
    %22 = vector.extract_strided_slice %15 {offsets = [0, 0, 0], sizes = [2, 8, 64], strides = [1, 1, 1]} : vector<2x8x128xf32> to vector<2x8x64xf32>
    %23 = vector.extract_strided_slice %15 {offsets = [0, 0, 64], sizes = [2, 8, 64], strides = [1, 1, 1]} : vector<2x8x128xf32> to vector<2x8x64xf32>
    %24 = tpu.concatenate %22, %23 in 0 : vector<2x8x64xf32>, vector<2x8x64xf32> -> vector<4x8x64xf32>
    "tpu.trace_start"() <{level = 10 : i32, message = "bqd,bkd->bqk"}> : () -> ()
    %cst_9 = arith.constant dense<0.000000e+00> : vector<4x8x8xf32>
    %25 = tpu.matmul %18, %21, %cst_9 {dimension_numbers = #tpu.dot_dimension_numbers<[2], [2], [1], [1], [0, 0, 0, 1, 1, 1], [0], [0]>} : vector<4x8x64xf32>, vector<4x8x64xf32>, vector<4x8x8xf32> -> vector<4x8x8xf32>
    "tpu.trace_stop"() : () -> ()
    %cst_10 = arith.constant 1.250000e-01 : f32
    %26 = vector.broadcast %cst_10 : f32 to vector<4x8x8xf32>
    %27 = arith.mulf %25, %26 : vector<4x8x8xf32>
    %cst_11 = arith.constant dense<0xFF800000> : vector<4x8xf32>
    %28 = vector.multi_reduction <maximumf>, %27, %cst_11 [2] : vector<4x8x8xf32> to vector<4x8xf32>
    %29 = vector.shape_cast %28 : vector<4x8xf32> to vector<4x8x1xf32>
    %30 = vector.broadcast %29 : vector<4x8x1xf32> to vector<4x8x8xf32>
    %31 = arith.subf %27, %30 : vector<4x8x8xf32>
    %32 = math.exp %31 : vector<4x8x8xf32>
    %cst_12 = arith.constant dense<0.000000e+00> : vector<4x8xf32>
    %33 = vector.multi_reduction <add>, %32, %cst_12 [2] : vector<4x8x8xf32> to vector<4x8xf32>
    %34 = vector.shape_cast %33 : vector<4x8xf32> to vector<4x8x1xf32>
    %35 = tpu.reciprocal %34 {approx = true} : vector<4x8x1xf32> -> vector<4x8x1xf32>
    %36 = vector.broadcast %35 : vector<4x8x1xf32> to vector<4x8x8xf32>
    %37 = arith.mulf %32, %36 : vector<4x8x8xf32>
    "tpu.trace_start"() <{level = 10 : i32, message = "bqk,bkd->bqd"}> : () -> ()
    %cst_13 = arith.constant dense<0.000000e+00> : vector<4x8x64xf32>
    %38 = tpu.matmul %37, %24, %cst_13 {dimension_numbers = #tpu.dot_dimension_numbers<[2], [1], [1], [2], [0, 0, 0, 1, 1, 2], [0], [0]>} : vector<4x8x8xf32>, vector<4x8x64xf32>, vector<4x8x64xf32> -> vector<4x8x64xf32>
    "tpu.trace_stop"() : () -> ()
    %39 = vector.extract_strided_slice %38 {offsets = [0, 0, 0], sizes = [2, 8, 64], strides = [1, 1, 1]} : vector<4x8x64xf32> to vector<2x8x64xf32>
    %40 = vector.extract_strided_slice %38 {offsets = [2, 0, 0], sizes = [2, 8, 64], strides = [1, 1, 1]} : vector<4x8x64xf32> to vector<2x8x64xf32>
    %41 = tpu.concatenate %39, %40 in 2 : vector<2x8x64xf32>, vector<2x8x64xf32> -> vector<2x8x128xf32>
    %42 = vector.shape_cast %41 : vector<2x8x128xf32> to vector<16x128xf32>
    %c0_14 = arith.constant 0 : index
    %c0_15 = arith.constant 0 : index
    %43 = vector.load %arg5[%c0_14, %c0_15] : memref<128x128xf32, #tpu.memory_space<vmem>>, vector<128x128xf32>
    %cst_16 = arith.constant dense<0.000000e+00> : vector<16x128xf32>
    %44 = tpu.matmul %42, %43, %cst_16 {dimension_numbers = #tpu.dot_dimension_numbers<[1], [0], [0], [1], [0, 0, 1, 1], [], []>} : vector<16x128xf32>, vector<128x128xf32>, vector<16x128xf32> -> vector<16x128xf32>
    %c0_17 = arith.constant 0 : index
    %c0_18 = arith.constant 0 : index
    %45 = vector.load %arg6[%c0_17, %c0_18] : memref<1x128xf32, #tpu.memory_space<vmem>>, vector<1x128xf32>
    %46 = vector.broadcast %45 : vector<1x128xf32> to vector<16x128xf32>
    %47 = arith.addf %44, %46 : vector<16x128xf32>
    %48 = vector.shape_cast %47 : vector<16x128xf32> to vector<2x8x128xf32>
    %49 = vector.extract_strided_slice %48 {offsets = [0, 0, 0], sizes = [2, 1, 128], strides = [1, 1, 1]} : vector<2x8x128xf32> to vector<2x1x128xf32>
    %50 = vector.shape_cast %49 : vector<2x1x128xf32> to vector<2x128xf32>
    %51 = vector.extract_strided_slice %48 {offsets = [0, 1, 0], sizes = [2, 1, 128], strides = [1, 1, 1]} : vector<2x8x128xf32> to vector<2x1x128xf32>
    %52 = vector.shape_cast %51 : vector<2x1x128xf32> to vector<2x128xf32>
    %53 = vector.extract_strided_slice %48 {offsets = [0, 2, 0], sizes = [2, 1, 128], strides = [1, 1, 1]} : vector<2x8x128xf32> to vector<2x1x128xf32>
    %54 = vector.shape_cast %53 : vector<2x1x128xf32> to vector<2x128xf32>
    %55 = vector.extract_strided_slice %48 {offsets = [0, 3, 0], sizes = [2, 1, 128], strides = [1, 1, 1]} : vector<2x8x128xf32> to vector<2x1x128xf32>
    %56 = vector.shape_cast %55 : vector<2x1x128xf32> to vector<2x128xf32>
    %57 = vector.extract_strided_slice %48 {offsets = [0, 4, 0], sizes = [2, 1, 128], strides = [1, 1, 1]} : vector<2x8x128xf32> to vector<2x1x128xf32>
    %58 = vector.shape_cast %57 : vector<2x1x128xf32> to vector<2x128xf32>
    %59 = vector.extract_strided_slice %48 {offsets = [0, 5, 0], sizes = [2, 1, 128], strides = [1, 1, 1]} : vector<2x8x128xf32> to vector<2x1x128xf32>
    %60 = vector.shape_cast %59 : vector<2x1x128xf32> to vector<2x128xf32>
    %61 = vector.extract_strided_slice %48 {offsets = [0, 6, 0], sizes = [2, 1, 128], strides = [1, 1, 1]} : vector<2x8x128xf32> to vector<2x1x128xf32>
    %62 = vector.shape_cast %61 : vector<2x1x128xf32> to vector<2x128xf32>
    %63 = vector.extract_strided_slice %48 {offsets = [0, 7, 0], sizes = [2, 1, 128], strides = [1, 1, 1]} : vector<2x8x128xf32> to vector<2x1x128xf32>
    %64 = vector.shape_cast %63 : vector<2x1x128xf32> to vector<2x128xf32>
    %65 = tpu.concatenate %50, %52, %54, %56, %58, %60, %62, %64 in 1 : vector<2x128xf32>, vector<2x128xf32>, vector<2x128xf32>, vector<2x128xf32>, vector<2x128xf32>, vector<2x128xf32>, vector<2x128xf32>, vector<2x128xf32> -> vector<2x1024xf32>
    %c0_19 = arith.constant 0 : index
    %c0_20 = arith.constant 0 : index
    %66 = vector.load %arg7[%c0_19, %c0_20] : memref<1024x32xf32, #tpu.memory_space<vmem>>, vector<1024x32xf32>
    %cst_21 = arith.constant dense<0.000000e+00> : vector<2x32xf32>
    %67 = tpu.matmul %65, %66, %cst_21 {dimension_numbers = #tpu.dot_dimension_numbers<[1], [0], [0], [1], [0, 0, 1, 1], [], []>} : vector<2x1024xf32>, vector<1024x32xf32>, vector<2x32xf32> -> vector<2x32xf32>
    %c0_22 = arith.constant 0 : index
    %c0_23 = arith.constant 0 : index
    %68 = vector.load %arg8[%c0_22, %c0_23] : memref<1x32xf32, #tpu.memory_space<vmem>>, vector<1x32xf32>
    %69 = vector.broadcast %68 : vector<1x32xf32> to vector<2x32xf32>
    %70 = arith.addf %67, %69 : vector<2x32xf32>
    %c0_24 = arith.constant 0 : index
    %c0_25 = arith.constant 0 : index
    %71 = vector.load %arg9[%c0_24, %c0_25] : memref<2x32xf32, #tpu.memory_space<vmem>>, vector<2x32xf32>
    tpu.vector_store %arg9[%c0_24, %c0_25], %70 {strides = array<i32>} : memref<2x32xf32, #tpu.memory_space<vmem>>, vector<2x32xf32>,
    return
  }
  func.func @transform_0(%arg0: i32) -> (i32, i32, i32) {
    %c0_i32 = arith.constant 0 : i32
    %c0_i32_0 = arith.constant 0 : i32
    %c0_i32_1 = arith.constant 0 : i32
    return %arg0, %c0_i32, %c0_i32_0 : i32, i32, i32
  }
  func.func @transform_1(%arg0: i32) -> (i32, i32, i32) {
    %c0_i32 = arith.constant 0 : i32
    %c0_i32_0 = arith.constant 0 : i32
    %c0_i32_1 = arith.constant 0 : i32
    return %arg0, %c0_i32, %c0_i32_0 : i32, i32, i32
  }
  func.func @transform_2(%arg0: i32) -> (i32, i32) {
    %c0_i32 = arith.constant 0 : i32
    %c0_i32_0 = arith.constant 0 : i32
    %c0_i32_1 = arith.constant 0 : i32
    return %c0_i32, %c0_i32_0 : i32, i32
  }
  func.func @transform_3(%arg0: i32) -> (i32, i32) {
    %c0_i32 = arith.constant 0 : i32
    %c0_i32_0 = arith.constant 0 : i32
    %c0_i32_1 = arith.constant 0 : i32
    return %c0_i32, %c0_i32_0 : i32, i32
  }
  func.func @transform_4(%arg0: i32) -> (i32, i32) {
    %c0_i32 = arith.constant 0 : i32
    %c0_i32_0 = arith.constant 0 : i32
    %c0_i32_1 = arith.constant 0 : i32
    return %c0_i32, %c0_i32_0 : i32, i32
  }
  func.func @transform_5(%arg0: i32) -> (i32, i32) {
    %c0_i32 = arith.constant 0 : i32
    %c0_i32_0 = arith.constant 0 : i32
    %c0_i32_1 = arith.constant 0 : i32
    return %c0_i32, %c0_i32_0 : i32, i32
  }
  func.func @transform_6(%arg0: i32) -> (i32, i32) {
    %c0_i32 = arith.constant 0 : i32
    %c0_i32_0 = arith.constant 0 : i32
    %c0_i32_1 = arith.constant 0 : i32
    return %c0_i32, %c0_i32_0 : i32, i32
  }
  func.func @transform_7(%arg0: i32) -> (i32, i32) {
    %c0_i32 = arith.constant 0 : i32
    %c0_i32_0 = arith.constant 0 : i32
    %c0_i32_1 = arith.constant 0 : i32
    return %c0_i32, %c0_i32_0 : i32, i32
  }
  func.func @transform_8(%arg0: i32) -> (i32, i32) {
    %c0_i32 = arith.constant 0 : i32
    %c0_i32_0 = arith.constant 0 : i32
    return %arg0, %c0_i32 : i32, i32
  }
}

</mosaic_0001>

<bundles_post_ra>
// kernel: tpu_custom_call.1
= control target key start
LH: loop header
LB: loop body
LE: loop exit
PB: predicated region body
PF: predicated region fallthrough
CT: control target
= control target key end

     0   :  { %v1858_v2 = vmov 0   ;;  %s2601_s0 = inlined_call_operand.vmem [shape: f32[2,8,128], index: 0, kind: input, shape index: {}]   ;;  %s2602_s1 = inlined_call_operand.vmem [shape: f32[2,8,1], index: 1, kind: input, shape index: {}]   ;;  %s2603_s2 = inlined_call_operand.vmem [shape: f32[128,384], index: 2, kind: input, shape index: {}]   ;;  %s2604_s3 = inlined_call_operand.vmem [shape: f32[1,384], index: 3, kind: input, shape index: {}]   ;;  %s2605_s4 = inlined_call_operand.vmem [shape: f32[128,128], index: 4, kind: input, shape index: {}]   ;;  %s2606_s5 = inlined_call_operand.vmem [shape: f32[1,128], index: 5, kind: input, shape index: {}]   ;;  %s2607_s6 = inlined_call_operand.vmem [shape: f32[1024,32], index: 6, kind: input, shape index: {}]   ;;  %s2608_s7 = inlined_call_operand.vmem [shape: f32[1,32], index: 7, kind: input, shape index: {}]   ;;  %s2609_s8 = inlined_call_operand.hbm [shape: f32[2,32], index: 8, kind: output, shape index: {}]  }
   0x1   :  { %v32_v0 = vld [vmem:[%s2602_s1] sm:$0xff]  ;;  %v92_v1 = vld [vmem:[%s2603_s2 + $0x170] sm:$0xff]  ;;  %1814 = vset.pattern.permute.xlu0 %v1858_v2  ;;  %v91_v3 = vld [vmem:[%s2603_s2 + $0x168] sm:$0xff] }
   0x2   :  { %111 = vmatprep.subr.mxu0 %v92_v1  ;;  %v89_v4 = vld [vmem:[%s2603_s2 + $0x158] sm:$0xff]  ;;  %v88_v5 = vld [vmem:[%s2603_s2 + $0x150] sm:$0xff]  ;;  %36 = vperm.xlu0 %1814, %v32_v0   ;;  %v86_v6 = vld [vmem:[%s2603_s2 + $0x140] sm:$0xff] }
   0x3   :  { %112 = vmatpush1.msra.mxu0 %v91_v3  ;;  %v93_v7 = vld [vmem:[%s2603_s2 + $0x178] sm:$0xff]  ;;  %v33_v8 = vld [vmem:[%s2602_s1 + $0x8] sm:$0xff]  ;;  %v90_v10 = vld [vmem:[%s2603_s2 + $0x160] sm:$0xff] }
   0x4   :  { %113 = vmatprep.subr.mxu0 %v89_v4  ;;  %1699 = vmatprep.subr.mxu1 %v93_v7  ;;  %v85_v9 = vld [vmem:[%s2603_s2 + $0x138] sm:$0xff]  ;;  %v83_v11 = vld [vmem:[%s2603_s2 + $0x128] sm:$0xff]  ;;  %v82_v12 = vld [vmem:[%s2603_s2 + $0x120] sm:$0xff] }
   0x5   :  { %114 = vmatpush1.msra.mxu0 %v88_v5  ;;  %1700 = vmatpush3.msra.mxu1 %v93_v7  ;;  %v87_v13 = vld [vmem:[%s2603_s2 + $0x148] sm:$0xff]  ;;  %v80_v14 = vld [vmem:[%s2603_s2 + $0x110] sm:$0xff]  ;;  %v77_v17 = vld [vmem:[%s2603_s2 + $0xf8] sm:$0xff] }
   0x6   :  { %115 = vmatprep.subr.mxu0 %v86_v6  ;;  %1701 = vmatprep.subr.mxu1 %v90_v10  ;;  %v79_v15 = vld [vmem:[%s2603_s2 + $0x108] sm:$0xff]  ;;  %v84_v16 = vld [vmem:[%s2603_s2 + $0x130] sm:$0xff]  ;;  %v81_v19 = vld [vmem:[%s2603_s2 + $0x118] sm:$0xff] }
   0x7   :  { %41 = vperm.xlu0 %1814, %v33_v8   ;;  %116 = vmatpush1.msra.mxu0 %v85_v9  ;;  %v76_v18 = vld [vmem:[%s2603_s2 + $0xf0] sm:$0xff]  ;;  %v74_v20 = vld [vmem:[%s2603_s2 + $0xe0] sm:$0xff]  ;;  %v73_v21 = vld [vmem:[%s2603_s2 + $0xd8] sm:$0xff] }
   0x8   :  { %117 = vmatprep.subr.mxu0 %v83_v11  ;;  %1702 = vmatpush3.msra.mxu1 %v90_v10  ;;  %v78_v22 = vld [vmem:[%s2603_s2 + $0x100] sm:$0xff]  ;;  %v71_v23 = vld [vmem:[%s2603_s2 + $0xc8] sm:$0xff]  ;;  %v68_v26 = vld [vmem:[%s2603_s2 + $0xb0] sm:$0xff] }
   0x9   :  { %118 = vmatpush1.msra.mxu0 %v82_v12  ;;  %1703 = vmatprep.subr.mxu1 %v87_v13  ;;  %v70_v24 = vld [vmem:[%s2603_s2 + $0xc0] sm:$0xff]  ;;  %v75_v25 = vld [vmem:[%s2603_s2 + $0xe8] sm:$0xff]  ;;  %v72_v28 = vld [vmem:[%s2603_s2 + $0xd0] sm:$0xff] }
   0xa   :  { %119 = vmatprep.subr.mxu0 %v80_v14  ;;  %1704 = vmatpush3.msra.mxu1 %v87_v13  ;;  %v67_v27 = vld [vmem:[%s2603_s2 + $0xa8] sm:$0xff]  ;;  %v65_v29 = vld [vmem:[%s2603_s2 + $0x98] sm:$0xff]  ;;  %v64_v30 = vld [vmem:[%s2603_s2 + $0x90] sm:$0xff] }
   0xb   :  { %120 = vmatpush1.msra.mxu0 %v79_v15  ;;  %1705 = vmatprep.subr.mxu1 %v84_v16  ;;  %v69_v31 = vld [vmem:[%s2603_s2 + $0xb8] sm:$0xff] }
   0xc   :  { %121 = vmatprep.subr.mxu0 %v77_v17  ;;  %1706 = vmatpush3.msra.mxu1 %v84_v16 }
   0xd   :  { %122 = vmatpush1.msra.mxu0 %v76_v18  ;;  %1707 = vmatprep.subr.mxu1 %v81_v19 }
   0xe   :  { %123 = vmatprep.subr.mxu0 %v74_v20  ;;  %1708 = vmatpush3.msra.mxu1 %v81_v19 }
   0xf   :  { %124 = vmatpush1.msra.mxu0 %v73_v21  ;;  %1709 = vmatprep.subr.mxu1 %v78_v22 }
  0x10   :  { %125 = vmatprep.subr.mxu0 %v71_v23  ;;  %1710 = vmatpush3.msra.mxu1 %v78_v22 }
  0x11   :  { %126 = vmatpush1.msra.mxu0 %v70_v24  ;;  %1711 = vmatprep.subr.mxu1 %v75_v25 }
  0x12   :  { %127 = vmatprep.subr.mxu0 %v68_v26  ;;  %1712 = vmatpush3.msra.mxu1 %v75_v25 }
  0x13   :  { %13 = vsyncpa [#allocation3], 0  ;;  %128 = vmatpush1.msra.mxu0 %v67_v27  ;;  %1713 = vmatprep.subr.mxu1 %v72_v28  ;;  %v62_v32 = vld [vmem:[%s2603_s2 + $0x80] sm:$0xff]  ;;  %v61_v33 = vld [vmem:[%s2603_s2 + $0x78] sm:$0xff]  ;;  %v1859_v50 = vmov 0.0   ;;  %vm1860_vm0 = vmmov 0   ;;  %v96_v58 = vlaneseq }
  0x14   :  { %129 = vmatprep.subr.mxu0 %v65_v29  ;;  %1714 = vmatpush3.msra.mxu1 %v72_v28  ;;  %v66_v34 = vld [vmem:[%s2603_s2 + $0xa0] sm:$0xff]  ;;  %v59_v35 = vld [vmem:[%s2603_s2 + $0x68] sm:$0xff]  ;;  %v56_v38 = vld [vmem:[%s2603_s2 + $0x50] sm:$0xff]  ;;  %vm283_vm1 = vcmask 523264   ;;  %s1861_s17 = smov 64   ;;  %vm584_vm2 = vcmask 64512  }
  0x15   :  { %130 = vmatpush1.msra.mxu0 %v64_v30  ;;  %1715 = vmatprep.subr.mxu1 %v69_v31  ;;  %v58_v36 = vld [vmem:[%s2603_s2 + $0x60] sm:$0xff]  ;;  %v63_v37 = vld [vmem:[%s2603_s2 + $0x88] sm:$0xff]  ;;  %v60_v40 = vld [vmem:[%s2603_s2 + $0x70] sm:$0xff]  ;;  %v97_v59 = vshrl.u32 %v96_v58, 7  ;;  %vm1032_vm3 = vcmask 1041409   ;;  %s1862_s11 = smov [#allocation2]  }
  0x16   :  { %131 = vmatprep.subr.mxu0 %v62_v32  ;;  %1716 = vmatpush3.msra.mxu1 %v69_v31  ;;  %v55_v39 = vld [vmem:[%s2603_s2 + $0x48] sm:$0xff]  ;;  %v53_v41 = vld [vmem:[%s2603_s2 + $0x38] sm:$0xff]  ;;  %v52_v42 = vld [vmem:[%s2603_s2 + $0x30] sm:$0xff]  ;;  %s1485_s12 = sshll.u32 %s1862_s11, 4  ;;  %vm1477_vm4 = vcmask 254976   ;;  %s1486_s12 = int_to_ptr.vmem [resolvable:$true] %s1485_s12 }
  0x17   :  { %132 = vmatpush1.msra.mxu0 %v61_v33  ;;  %1717 = vmatprep.subr.mxu1 %v66_v34  ;;  %v57_v43 = vld [vmem:[%s2603_s2 + $0x58] sm:$0xff]  ;;  %v50_v44 = vld [vmem:[%s2603_s2 + $0x20] sm:$0xff]  ;;  %v47_v47 = vld [vmem:[%s2603_s2 + $0x8] sm:$0xff]  ;;  %v102_v60 = vsub.s32 1, %v97_v59  ;;  %v106_v61 = vsub.s32 2, %v97_v59  ;;  %v98_v63 = vsub.s32 0, %v97_v59  ;;  %p1841_p1 = scmp.lt.s32.totalorder %s1486_s12, %s1486_s12 }
  0x18   :  { %133 = vmatprep.subr.mxu0 %v59_v35  ;;  %1718 = vmatpush3.msra.mxu1 %v66_v34  ;;  %v49_v45 = vld [vmem:[%s2603_s2 + $0x18] sm:$0xff]  ;;  %v54_v46 = vld [vmem:[%s2603_s2 + $0x40] sm:$0xff]  ;;  %v51_v49 = vld [vmem:[%s2603_s2 + $0x28] sm:$0xff]  ;;  %s1836_s13 = scalar_lea.vmem %s1486_s12, 32 }
  0x19   :  { %134 = vmatpush1.msra.mxu0 %v58_v36  ;;  %1719 = vmatprep.subr.mxu1 %v63_v37  ;;  %v46_v48 = vld [vmem:[%s2603_s2] sm:$0xff]  ;;  %v48_v51 = vld [vmem:[%s2603_s2 + $0x10] sm:$0xff]  ;;  %v31_v55 = vld [vmem:[%s2601_s0 + $0x8] sm:$0xff]  ;;  %p1837_p0 = scmp.ne.s32.totalorder %s1486_s12, %s1836_s13  ;;  %p1842_p2 = scmp.lt.s32.totalorder %s1836_s13, %s1836_s13 }
  0x1a   :  { %135 = vmatprep.subr.mxu0 %v56_v38  ;;  %1720 = vmatpush3.msra.mxu1 %v63_v37  ;;  %v30_v52 = vld [vmem:[%s2601_s0] sm:$0xff] }
  0x1b   :  { %136 = vmatpush1.msra.mxu0 %v55_v39  ;;  %1721 = vmatprep.subr.mxu1 %v60_v40  ;;  %v94_v62 = vld [vmem:[%s2604_s3] sm:$0x7]  ;;  %p1843_p3 = por %p1842_p2, %p1841_p1 }
  0x1c   :  { %137 = vmatprep.subr.mxu0 %v53_v41  ;;  %1722 = vmatpush3.msra.mxu1 %v60_v40  ;;  %v103_v0 = vrot.slane %v94_v62, %v102_v60  ;;  %v107_v2 = vrot.slane %v94_v62, %v106_v61  ;;  %v99_v3 = vrot.slane %v94_v62, %v98_v63 }
  0x1d   :  { %138 = vmatpush1.msra.mxu0 %v52_v42  ;;  %1723 = vmatprep.subr.mxu1 %v57_v43  ;;  %p1844_p4 = pnand %p1843_p3, %p1837_p0 }
  0x1e   :  { %139 = vmatprep.subr.mxu0 %v50_v44  ;;  %1724 = vmatpush3.msra.mxu1 %v57_v43 }
  0x1f   :  { %140 = vmatpush1.msra.mxu0 %v49_v45  ;;  %1725 = vmatprep.subr.mxu1 %v54_v46 }
  0x20   :  { %141 = vmatprep.subr.mxu0 %v47_v47  ;;  %175 = vmatprep.mubr.f32.mxu0 %v1859_v50 }
  0x21   :  { %142 = vmatpush1.msra.mxu0 %v46_v48  ;;  %1726 = vmatpush3.msra.mxu1 %v54_v46 }
  0x22   :  { %1727 = vmatprep.subr.mxu1 %v51_v49  ;;  %1734 = vmatprep.subr.mxu0 %v1859_v50 }
  0x23   :  { %1728 = vmatpush3.msra.mxu1 %v51_v49 }
  0x24   :  { %1729 = vmatprep.subr.mxu1 %v48_v51 }
  0x25   :  { %1730 = vmatpush3.msra.mxu1 %v48_v51 }
  0x26   :  { %1764 = vmatprep.subr.mxu1 %v1859_v50 }
  0x7d   :  { %v37_v53 = vpop.permute.xlu0 %36 }
  0x7e   :  { %v44_v54 = vmul.f32 %v37_v53, %v30_v52 }
  0x80   :  { %176 = vmatmul.mubr.f32.vlgmr.msra.gmra.mxu0 %v44_v54  ;;  %1731 = vmatprep.mubr.f32.mxu1 %v44_v54 }
  0x81   :  { %181 = vmatprep.mubr.f32.mxu0 %v1859_v50 }
  0x82   :  { %v42_v56 = vpop.permute.xlu0 %41 }
  0x83   :  { %v45_v57 = vmul.f32 %v42_v56, %v31_v55 }
  0x85   :  { %182 = vmatmul.mubr.f32.gmra.mxu0 %v45_v57  ;;  %1732 = vmatmul.mubr.f32.vlgmr.msra.gmra.mxu1 %v45_v57 }
  0x86   :  { %1736 = vmatprep.mubr.msk.f32.mxu0 %vm1860_vm0, %v1859_v50  ;;  %1766 = vmatprep.mubr.msk.f32.mxu1 %vm1860_vm0, %v1859_v50 }
 0x140   :  { %v177_v1 = vpop.f32.mrf.mxu0 }
 0x141   :  { %v178_v9 = vadd.f32 %v177_v1, %v99_v3 }
 0x142   :  { %v179_v4 = vpop.f32.mrf.mxu0 }
 0x143   :  { %v180_v5 = vadd.f32 %v179_v4, %v103_v0 }
 0x145   :  { %v183_v6 = vpop.f32.mrf.mxu0  ;;  %v1733_v7 = vpop.f32.mrf.mxu1  ;;  %271 = vrot.lane.b32.xlu1 %v180_v5, %s1861_s17  ;;  %1735 = vmatpush3.xpose.msk.msra.mxu0 %vm283_vm1, %v180_v5 }
 0x146   :  { %v2075_v8 = vadd.f32 %v1733_v7, %v107_v2  ;;  %1739 = vmatprep.subr.mxu0 %v1859_v50  ;;  %v184_v12 = vadd.f32 %v183_v6, %v99_v3  ;;  %v945_v6 = vld [vmem:[%s2605_s4 + $0x70] sm:$0xff]  ;;  %v944_v7 = vld [vmem:[%s2605_s4 + $0x68] sm:$0xff] }
 0x147   :  { %v185_v10 = vpop.f32.mrf.mxu0  ;;  %v254_v16 = vpop.f32.mrf.mxu1 }
 0x148   :  { %v186_v11 = vadd.f32 %v185_v10, %v103_v0  ;;  %1737 = vmatmul.mubr.msk.f32.vlgmr.msra.gmra.mxu0 %vm283_vm1, %v178_v9  ;;  %v255_v17 = vadd.f32 %v254_v16, %v107_v2  ;;  %v942_v10 = vld [vmem:[%s2605_s4 + $0x58] sm:$0xff]  ;;  %v939_v16 = vld [vmem:[%s2605_s4 + $0x40] sm:$0xff] }
 0x149   :  { %265 = vrot.lane.b32.xlu1 %v178_v9, %s1861_s17  ;;  %1741 = vmatprep.mubr.msk.f32.mxu0 %vm1860_vm0, %v1859_v50 }
 0x14a   :  { %273 = vrot.lane.b32.xlu0 %v186_v11, %s1861_s17  ;;  %1740 = vmatpush3.xpose.msk.msra.mxu0 %vm283_vm1, %v186_v11 }
 0x14b   :  { %1744 = vmatprep.subr.mxu0 %v1859_v50 }
 0x14d   :  { %1742 = vmatmul.mubr.msk.f32.vlgmr.msra.gmra.mxu0 %vm283_vm1, %v184_v12  ;;  %267 = vrot.lane.b32.xlu1 %v184_v12, %s1861_s17  ;;  %v941_v12 = vld [vmem:[%s2605_s4 + $0x50] sm:$0xff] }
 0x14e   :  { %1746 = vmatprep.mubr.msk.f32.mxu0 %vm1860_vm0, %v1859_v50 }
 0x1b7   :  { %v272_v13 = vpop.permute.xlu1 %271 }
 0x1b8   :  { %1745 = vmatpush3.xpose.msk.msra.mxu0 %vm283_vm1, %v272_v13 }
 0x1b9   :  { %1749 = vmatprep.subr.mxu0 %v1859_v50 }
 0x1bb   :  { %v266_v15 = vpop.permute.xlu1 %265 }
 0x1bc   :  { %v274_v14 = vpop.permute.xlu0 %273  ;;  %1747 = vmatmul.mubr.msk.f32.vlgmr.msra.gmra.mxu0 %vm283_vm1, %v266_v15 }
 0x1bd   :  { %1750 = vmatpush3.xpose.msk.msra.mxu0 %vm283_vm1, %v274_v14  ;;  %1751 = vmatprep.mubr.msk.f32.mxu0 %vm1860_vm0, %v1859_v50  ;;  %v940_v14 = vld [vmem:[%s2605_s4 + $0x48] sm:$0xff] }
 0x1be   :  { %1754 = vmatprep.subr.mxu0 %v1859_v50 }
 0x1bf   :  { %v268_v18 = vpop.permute.xlu1 %267 }
 0x1c0   :  { %1752 = vmatmul.mubr.msk.f32.vlgmr.msra.gmra.mxu0 %vm283_vm1, %v268_v18  ;;  %v937_v18 = vld [vmem:[%s2605_s4 + $0x30] sm:$0xff] }
 0x1c1   :  { %1755 = vmatpush3.msra.mxu0 %v255_v17  ;;  %1756 = vmatprep.mubr.msk.f32.mxu0 %vm1860_vm0, %v1859_v50 }
 0x1c2   :  { %1759 = vmatprep.subr.mxu0 %v1859_v50 }
 0x208   :  { %v354_v19 = vpop.f32.mrf.mxu0 }
 0x209   :  { %v580_v20 = vmul.f32 0.125, %v354_v19  ;;  %v936_v19 = vld [vmem:[%s2605_s4 + $0x28] sm:$0xff] }
 0x20a   :  { %v1738_v21 = vpop.f32.mrf.mxu0 }
 0x20b   :  { %v585_v22 = vsel %vm584_vm2, %v580_v20, -inf  ;;  %v934_v21 = vld [vmem:[%s2605_s4 + $0x18] sm:$0xff] }
 0x20c   :  { %586 = vmax.xlane.f32.xlu0 %v585_v22  ;;  %v933_v22 = vld [vmem:[%s2605_s4 + $0x10] sm:$0xff] }
 0x20d   :  { %v428_v23 = vpop.f32.mrf.mxu0 }
 0x20e   :  { %v581_v24 = vmul.f32 0.125, %v428_v23  ;;  %v932_v23 = vld [vmem:[%s2605_s4 + $0x8] sm:$0xff] }
 0x20f   :  { %v1743_v25 = vpop.f32.mrf.mxu0 }
 0x210   :  { %v588_v26 = vsel %vm584_vm2, %v581_v24, -inf  ;;  %v1093_v25 = vld [vmem:[%s2607_s6 + $0xf8] sm:$0xff] }
 0x211   :  { %589 = vmax.xlane.f32.xlu1 %v588_v26  ;;  %v1125_v26 = vld [vmem:[%s2607_s6 + $0x1f8] sm:$0xff] }
 0x27c   :  { %v502_v27 = vpop.f32.mrf.mxu0 }
 0x27d   :  { %v582_v28 = vmul.f32 0.125, %v502_v27  ;;  %v1077_v27 = vld [vmem:[%s2607_s6 + $0x78] sm:$0xff] }
 0x27e   :  { %v1748_v29 = vpop.f32.mrf.mxu0 }
 0x27f   :  { %v591_v30 = vsel %vm584_vm2, %v582_v28, -inf }
 0x280   :  { %592 = vmax.xlane.f32.xlu0 %v591_v30  ;;  %v576_v31 = vpop.f32.mrf.mxu0  ;;  %v1076_v30 = vld [vmem:[%s2607_s6 + $0x70] sm:$0xff] }
 0x281   :  { %v583_v32 = vmul.f32 0.125, %v576_v31  ;;  %v1091_v31 = vld [vmem:[%s2607_s6 + $0xe8] sm:$0xff] }
 0x282   :  { %v1753_v33 = vpop.f32.mrf.mxu0 }
 0x283   :  { %v594_v34 = vsel %vm584_vm2, %v583_v32, -inf  ;;  %v1075_v33 = vld [vmem:[%s2607_s6 + $0x68] sm:$0xff] }
 0x284   :  { %595 = vmax.xlane.f32.xlu0 %v594_v34  ;;  %v1090_v34 = vld [vmem:[%s2607_s6 + $0xe0] sm:$0xff] }
 0x295   :  { %v587_v35 = vpop.xlane.xlu0 %586 }
 0x296   :  { %v597_v36 = vsub.f32 %v580_v20, %v587_v35  ;;  %v935_v20 = vld [vmem:[%s2605_s4 + $0x20] sm:$0xff] }
 0x298   :  { %v601_v37 = vmul.f32 1.442695, %v597_v36  ;;  %v1074_v36 = vld [vmem:[%s2607_s6 + $0x60] sm:$0xff] }
 0x29a   :  { %1820 = vpow2.f32 %v601_v37  ;;  %v590_v38 = vpop.xlane.xlu1 %589 }
 0x29b   :  { %v598_v39 = vsub.f32 %v581_v24, %v590_v38  ;;  %v931_v24 = vld [vmem:[%s2605_s4] sm:$0xff]  ;;  %v1089_v38 = vld [vmem:[%s2607_s6 + $0xd8] sm:$0xff] }
 0x29d   :  { %v603_v40 = vmul.f32 1.442695, %v598_v39 }
 0x29f   :  { %1822 = vpow2.f32 %v603_v40  ;;  %v1073_v40 = vld [vmem:[%s2607_s6 + $0x58] sm:$0xff] }
 0x2a7   :  { %v1821_v41 = vpop.eup %1820 }
 0x2a8   :  { %v609_v42 = vsel %vm584_vm2, %v1821_v41, 0.0 }
 0x2a9   :  { %610 = vadd.xlane.f32.xlu1 %v609_v42  ;;  %v1072_v42 = vld [vmem:[%s2607_s6 + $0x50] sm:$0xff] }
 0x2ac   :  { %v1823_v43 = vpop.eup %1822 }
 0x2ad   :  { %v612_v44 = vsel %vm584_vm2, %v1823_v43, 0.0 }
 0x2ae   :  { %613 = vadd.xlane.f32.xlu0 %v612_v44  ;;  %v1071_v44 = vld [vmem:[%s2607_s6 + $0x48] sm:$0xff] }
 0x309   :  { %v593_v45 = vpop.xlane.xlu0 %592 }
 0x30a   :  { %v599_v46 = vsub.f32 %v582_v28, %v593_v45  ;;  %v1092_v28 = vld [vmem:[%s2607_s6 + $0xf0] sm:$0xff]  ;;  %v1086_v45 = vld [vmem:[%s2607_s6 + $0xc0] sm:$0xff] }
 0x30c   :  { %v605_v47 = vmul.f32 1.442695, %v599_v46  ;;  %v1070_v46 = vld [vmem:[%s2607_s6 + $0x40] sm:$0xff] }
 0x30d   :  { %v596_v48 = vpop.xlane.xlu0 %595 }
 0x30e   :  { %1824 = vpow2.f32 %v605_v47  ;;  %v600_v49 = vsub.f32 %v583_v32, %v596_v48  ;;  %v1085_v47 = vld [vmem:[%s2607_s6 + $0xb8] sm:$0xff] }
 0x30f   :  { %v1069_v48 = vld [vmem:[%s2607_s6 + $0x38] sm:$0xff] }
 0x310   :  { %v607_v51 = vmul.f32 1.442695, %v600_v49  ;;  %v1084_v49 = vld [vmem:[%s2607_s6 + $0xb0] sm:$0xff] }
 0x312   :  { %1826 = vpow2.f32 %v607_v51  ;;  %v1068_v51 = vld [vmem:[%s2607_s6 + $0x30] sm:$0xff] }
 0x31b   :  { %v1825_v52 = vpop.eup %1824 }
 0x31c   :  { %v615_v53 = vsel %vm584_vm2, %v1825_v52, 0.0 }
 0x31d   :  { %616 = vadd.xlane.f32.xlu1 %v615_v53  ;;  %v1067_v53 = vld [vmem:[%s2607_s6 + $0x28] sm:$0xff] }
 0x31f   :  { %v1827_v54 = vpop.eup %1826 }
 0x320   :  { %v618_v55 = vsel %vm584_vm2, %v1827_v54, 0.0 }
 0x321   :  { %619 = vadd.xlane.f32.xlu0 %v618_v55  ;;  %v1066_v55 = vld [vmem:[%s2607_s6 + $0x20] sm:$0xff] }
 0x32e   :  { %277 = vrot.lane.b32.xlu1 %v255_v17, %s1861_s17  ;;  %v938_v17 = vld [vmem:[%s2605_s4 + $0x38] sm:$0xff] }
 0x332   :  { %v611_v56 = vpop.xlane.xlu1 %610 }
 0x333   :  { %1828 = vrcp.f32 %v611_v56 }
 0x337   :  { %v614_v57 = vpop.xlane.xlu0 %613  ;;  %279 = vrot.lane.b32.xlu0 %v2075_v8, %s1861_s17 }
 0x338   :  { %1830 = vrcp.f32 %v614_v57 }
 0x340   :  { %v1829_v58 = vpop.eup %1828 }
 0x341   :  { %v625_v59 = vmul.f32 %v1829_v58, %v1821_v41  ;;  %v1088_v41 = vld [vmem:[%s2607_s6 + $0xd0] sm:$0xff] }
 0x343   :  { %1757 = vmatmul.mubr.msk.f32.vlgmr.msra.gmra.mxu0 %vm584_vm2, %v625_v59 }
 0x344   :  { %1760 = vmatpush3.msra.mxu0 %v2075_v8  ;;  %1761 = vmatprep.mubr.msk.f32.mxu0 %vm1860_vm0, %v1859_v50  ;;  %v943_v8 = vld [vmem:[%s2605_s4 + $0x60] sm:$0xff] }
 0x345   :  { %v1831_v60 = vpop.eup %1830  ;;  %1769 = vmatprep.subr.mxu0 %v1859_v50 }
 0x346   :  { %v626_v61 = vmul.f32 %v1831_v60, %v1823_v43  ;;  %v1087_v43 = vld [vmem:[%s2607_s6 + $0xc8] sm:$0xff] }
 0x348   :  { %1762 = vmatmul.mubr.msk.f32.vlgmr.msra.gmra.mxu0 %vm584_vm2, %v626_v61  ;;  %v1109_v61 = vld [vmem:[%s2607_s6 + $0x178] sm:$0xff] }
 0x349   :  { %1771 = vmatprep.mubr.msk.f32.mxu0 %vm1860_vm0, %v1859_v50  ;;  %v946_v50 = vld [vmem:[%s2605_s4 + $0x78] sm:$0xff] }
 0x3a6   :  { %v617_v62 = vpop.xlane.xlu1 %616 }
 0x3a7   :  { %1832 = vrcp.f32 %v617_v62  ;;  %v1124_v62 = vld [vmem:[%s2607_s6 + $0x1f0] sm:$0xff] }
 0x3aa   :  { %v278_v63 = vpop.permute.xlu1 %277  ;;  %v620_v0 = vpop.xlane.xlu0 %619 }
 0x3ab   :  { %1834 = vrcp.f32 %v620_v0  ;;  %1765 = vmatpush3.msra.mxu1 %v278_v63  ;;  %v1108_v63 = vld [vmem:[%s2607_s6 + $0x170] sm:$0xff]  ;;  %v1123_v0 = vld [vmem:[%s2607_s6 + $0x1e8] sm:$0xff] }
 0x3ac   :  { %1774 = vmatprep.subr.mxu1 %v946_v50 }
 0x3ae   :  { %v280_v1 = vpop.permute.xlu0 %279 }
 0x3af   :  { %1770 = vmatpush3.msra.mxu0 %v280_v1  ;;  %v1107_v1 = vld [vmem:[%s2607_s6 + $0x168] sm:$0xff] }
 0x3b0   :  { %1559 = vmatprep.subr.mxu0 %v1093_v25  ;;  %v1064_v25 = vld [vmem:[%s2607_s6 + $0x10] sm:$0xff] }
 0x3b4   :  { %v1833_v2 = vpop.eup %1832 }
 0x3b5   :  { %v627_v3 = vmul.f32 %v1833_v2, %v1825_v52  ;;  %v1083_v52 = vld [vmem:[%s2607_s6 + $0xa8] sm:$0xff]  ;;  %v1122_v2 = vld [vmem:[%s2607_s6 + $0x1e0] sm:$0xff] }
 0x3b7   :  { %1767 = vmatmul.mubr.msk.f32.vlgmr.msra.gmra.mxu1 %vm584_vm2, %v627_v3  ;;  %v1106_v3 = vld [vmem:[%s2607_s6 + $0x160] sm:$0xff] }
 0x3b8   :  { %v1835_v4 = vpop.eup %1834  ;;  %1775 = vmatpush3.msra.mxu1 %v946_v50  ;;  %v1120_v50 = vld [vmem:[%s2607_s6 + $0x1d0] sm:$0xff] }
 0x3b9   :  { %v628_v5 = vmul.f32 %v1835_v4, %v1827_v54  ;;  %1776 = vmatprep.subr.mxu1 %v945_v6  ;;  %v1082_v54 = vld [vmem:[%s2607_s6 + $0xa0] sm:$0xff]  ;;  %v1121_v4 = vld [vmem:[%s2607_s6 + $0x1d8] sm:$0xff] }
 0x3ba   :  { %1777 = vmatpush3.msra.mxu1 %v945_v6  ;;  %v1104_v6 = vld [vmem:[%s2607_s6 + $0x150] sm:$0xff] }
 0x3bb   :  { %1772 = vmatmul.mubr.msk.f32.vlgmr.msra.gmra.mxu0 %vm584_vm2, %v628_v5  ;;  %1778 = vmatprep.subr.mxu1 %v944_v7  ;;  %v1105_v5 = vld [vmem:[%s2607_s6 + $0x158] sm:$0xff] }
 0x3bc   :  { %1779 = vmatpush3.msra.mxu1 %v944_v7  ;;  %1560 = vmatpush3.msra.mxu0 %v1077_v27  ;;  %v1119_v7 = vld [vmem:[%s2607_s6 + $0x1c8] sm:$0xff] }
 0x3bd   :  { %1780 = vmatprep.subr.mxu1 %v943_v8  ;;  %1561 = vmatprep.subr.mxu0 %v1092_v28  ;;  %v1079_v27 = vld [vmem:[%s2607_s6 + $0x88] sm:$0xff] }
 0x3be   :  { %1781 = vmatpush3.msra.mxu1 %v943_v8  ;;  %1562 = vmatpush3.msra.mxu0 %v1076_v30  ;;  %v1103_v8 = vld [vmem:[%s2607_s6 + $0x148] sm:$0xff] }
 0x3bf   :  { %1782 = vmatprep.subr.mxu1 %v942_v10  ;;  %1563 = vmatprep.subr.mxu0 %v1091_v31  ;;  %v1111_v28 = vld [vmem:[%s2607_s6 + $0x188] sm:$0xff]  ;;  %v1078_v31 = vld [vmem:[%s2607_s6 + $0x80] sm:$0xff] }
 0x3c0   :  { %1783 = vmatpush3.msra.mxu1 %v942_v10  ;;  %1564 = vmatpush3.msra.mxu0 %v1075_v33  ;;  %v1102_v10 = vld [vmem:[%s2607_s6 + $0x140] sm:$0xff]  ;;  %v1095_v30 = vld [vmem:[%s2607_s6 + $0x108] sm:$0xff] }
 0x3c1   :  { %1784 = vmatprep.subr.mxu1 %v941_v12  ;;  %1565 = vmatprep.subr.mxu0 %v1090_v34  ;;  %v1062_v33 = vld [vmem:[%s2607_s6] sm:$0xff] }
 0x3c2   :  { %1785 = vmatpush3.msra.mxu1 %v941_v12  ;;  %1566 = vmatpush3.msra.mxu0 %v1074_v36  ;;  %v1101_v12 = vld [vmem:[%s2607_s6 + $0x138] sm:$0xff]  ;;  %v1094_v34 = vld [vmem:[%s2607_s6 + $0x100] sm:$0xff] }
 0x3c3   :  { %1786 = vmatprep.subr.mxu1 %v940_v14  ;;  %1567 = vmatprep.subr.mxu0 %v1089_v38  ;;  %v1189_v36 = vld [vmem:[%s2607_s6 + $0x3f8] sm:$0xff] }
 0x3c4   :  { %1787 = vmatpush3.msra.mxu1 %v940_v14  ;;  %1568 = vmatpush3.msra.mxu0 %v1073_v40  ;;  %v1100_v14 = vld [vmem:[%s2607_s6 + $0x130] sm:$0xff] }
 0x3c5   :  { %1788 = vmatprep.subr.mxu1 %v939_v16  ;;  %1569 = vmatprep.subr.mxu0 %v1088_v41 }
 0x3c6   :  { %1789 = vmatpush3.msra.mxu1 %v939_v16  ;;  %1570 = vmatpush3.msra.mxu0 %v1072_v42  ;;  %v1099_v16 = vld [vmem:[%s2607_s6 + $0x128] sm:$0xff] }
 0x3c7   :  { %1790 = vmatprep.subr.mxu1 %v938_v17  ;;  %1571 = vmatprep.subr.mxu0 %v1087_v43 }
 0x3c8   :  { %1791 = vmatpush3.msra.mxu1 %v938_v17  ;;  %1572 = vmatpush3.msra.mxu0 %v1071_v44  ;;  %v1114_v17 = vld [vmem:[%s2607_s6 + $0x1a0] sm:$0xff] }
 0x3c9   :  { %1792 = vmatprep.subr.mxu1 %v937_v18  ;;  %1573 = vmatprep.subr.mxu0 %v1086_v45 }
 0x3ca   :  { %1793 = vmatpush3.msra.mxu1 %v937_v18  ;;  %1574 = vmatpush3.msra.mxu0 %v1070_v46  ;;  %v1098_v18 = vld [vmem:[%s2607_s6 + $0x120] sm:$0xff] }
 0x3cb   :  { %1794 = vmatprep.subr.mxu1 %v936_v19  ;;  %1575 = vmatprep.subr.mxu0 %v1085_v47 }
 0x3cc   :  { %1795 = vmatpush3.msra.mxu1 %v936_v19  ;;  %1576 = vmatpush3.msra.mxu0 %v1069_v48  ;;  %v1081_v19 = vld [vmem:[%s2607_s6 + $0x98] sm:$0xff] }
 0x3cd   :  { %1796 = vmatprep.subr.mxu1 %v935_v20  ;;  %1577 = vmatprep.subr.mxu0 %v1084_v49 }
 0x3ce   :  { %1797 = vmatpush3.msra.mxu1 %v935_v20  ;;  %1578 = vmatpush3.msra.mxu0 %v1068_v51  ;;  %v1113_v20 = vld [vmem:[%s2607_s6 + $0x198] sm:$0xff] }
 0x3cf   :  { %1798 = vmatprep.subr.mxu1 %v934_v21  ;;  %1579 = vmatprep.subr.mxu0 %v1083_v52 }
 0x3d0   :  { %1799 = vmatpush3.msra.mxu1 %v934_v21  ;;  %1580 = vmatpush3.msra.mxu0 %v1067_v53  ;;  %v1065_v21 = vld [vmem:[%s2607_s6 + $0x18] sm:$0xff] }
 0x3d1   :  { %1800 = vmatprep.subr.mxu1 %v933_v22  ;;  %1581 = vmatprep.subr.mxu0 %v1082_v54  ;;  %v1141_v53 = vld [vmem:[%s2607_s6 + $0x278] sm:$0xff] }
 0x3d2   :  { %1801 = vmatpush3.msra.mxu1 %v933_v22  ;;  %1582 = vmatpush3.msra.mxu0 %v1066_v55  ;;  %v1097_v22 = vld [vmem:[%s2607_s6 + $0x118] sm:$0xff] }
 0x3d3   :  { %1802 = vmatprep.subr.mxu1 %v932_v23  ;;  %1583 = vmatprep.subr.mxu0 %v1081_v19  ;;  %v1173_v54 = vld [vmem:[%s2607_s6 + $0x378] sm:$0xff]  ;;  %v1167_v19 = vld [vmem:[%s2607_s6 + $0x348] sm:$0xff] }
 0x3d4   :  { %1803 = vmatpush3.msra.mxu1 %v932_v23  ;;  %1584 = vmatpush3.msra.mxu0 %v1065_v21  ;;  %v1080_v23 = vld [vmem:[%s2607_s6 + $0x90] sm:$0xff]  ;;  %v1182_v21 = vld [vmem:[%s2607_s6 + $0x3c0] sm:$0xff] }
 0x3d5   :  { %1804 = vmatprep.subr.mxu1 %v931_v24  ;;  %1585 = vmatprep.subr.mxu0 %v1080_v23  ;;  %v1166_v23 = vld [vmem:[%s2607_s6 + $0x340] sm:$0xff] }
 0x3d6   :  { %1805 = vmatpush3.msra.mxu1 %v931_v24  ;;  %v1112_v24 = vld [vmem:[%s2607_s6 + $0x190] sm:$0xff]  ;;  %1586 = vmatpush3.msra.mxu0 %v1064_v25  ;;  %v1181_v25 = vld [vmem:[%s2607_s6 + $0x3b8] sm:$0xff] }
 0x3d7   :  { %1594 = vmatprep.subr.mxu1 %v1125_v26  ;;  %v1096_v26 = vld [vmem:[%s2607_s6 + $0x110] sm:$0xff]  ;;  %1587 = vmatprep.subr.mxu0 %v1079_v27  ;;  %v1165_v27 = vld [vmem:[%s2607_s6 + $0x338] sm:$0xff] }
 0x403   :  { %v2135_v9 = vpop.f32.mrf.mxu0 }
 0x405   :  { %v1758_v11 = vpop.f32.mrf.mxu0 }
 0x406   :  { %v1117_v11 = vld [vmem:[%s2607_s6 + $0x1b8] sm:$0xff] }
 0x408   :  { %v2143_v13 = vpop.f32.mrf.mxu0 }
 0x40a   :  { %v1763_v15 = vpop.f32.mrf.mxu0 }
 0x40b   :  { %v1115_v15 = vld [vmem:[%s2607_s6 + $0x1a8] sm:$0xff] }
 0x477   :  { %v844_v29 = vpop.f32.mrf.mxu1 }
 0x479   :  { %v1768_v32 = vpop.f32.mrf.mxu1 }
 0x47a   :  { %v1110_v32 = vld [vmem:[%s2607_s6 + $0x180] sm:$0xff] }
 0x47b   :  { %v917_v35 = vpop.f32.mrf.mxu0 }
 0x47c   :  { %v1815_v37 = vpack.i.bf16 %v917_v35, %v844_v29  ;;  %v1063_v29 = vld [vmem:[%s2607_s6 + $0x8] sm:$0xff]  ;;  %v1157_v35 = vld [vmem:[%s2607_s6 + $0x2f8] sm:$0xff] }
 0x47d   :  { %v1773_v39 = vpop.f32.mrf.mxu0  ;;  %1588 = vmatpush3.msra.mxu0 %v1063_v29  ;;  %v1180_v29 = vld [vmem:[%s2607_s6 + $0x3b0] sm:$0xff] }
 0x47e   :  { %1816 = vrot.lane.b32.xlu1 %v1815_v37, %s1861_s17  ;;  %1589 = vmatprep.subr.mxu0 %v1078_v31  ;;  %v1505_v37 = vld [vmem:[%s2606_s5] ss:$0 sm:$0xff]  ;;  %v1164_v31 = vld [vmem:[%s2607_s6 + $0x330] sm:$0xff] }
 0x47f   :  { %1590 = vmatpush3.msra.mxu0 %v1062_v33  ;;  %v1179_v33 = vld [vmem:[%s2607_s6 + $0x3a8] sm:$0xff] }
 0x480   :  { %1629 = vmatprep.subr.mxu0 %v1157_v35  ;;  %v1163_v35 = vld [vmem:[%s2607_s6 + $0x328] sm:$0xff] }
 0x4f0   :  { %v1817_v56 = vpop.permute.xlu1 %1816 }
 0x4f1   :  { %v1819_v57 = vunpack.i.h.bf16 %v1817_v56  ;;  %v1818_v58 = vunpack.i.l.bf16 %v1817_v56 }
 0x4f3   :  { %v929_v59 = vsel %vm283_vm1, %v2135_v9, %v1818_v58  ;;  %v930_v60 = vsel %vm283_vm1, %v2143_v13, %v1819_v57  ;;  %v1118_v9 = vld [vmem:[%s2607_s6 + $0x1c0] sm:$0xff]  ;;  %v1116_v13 = vld [vmem:[%s2607_s6 + $0x1b0] sm:$0xff] }
 0x4f4   :  { %1806 = vmatprep.mubr.f32.mxu1 %v929_v59  ;;  %v1156_v57 = vld [vmem:[%s2607_s6 + $0x2f0] sm:$0xff] }
 0x4f5   :  { %1807 = vmatmul.mubr.f32.vlgmr.msra.gmra.mxu1 %v930_v60  ;;  %v1188_v59 = vld [vmem:[%s2607_s6 + $0x3f0] sm:$0xff] }
 0x4f6   :  { %1595 = vmatpush3.msra.mxu1 %v1109_v61 }
 0x4f7   :  { %1596 = vmatprep.subr.mxu1 %v1124_v62  ;;  %v1140_v62 = vld [vmem:[%s2607_s6 + $0x270] sm:$0xff] }
 0x4f8   :  { %1597 = vmatpush3.msra.mxu1 %v1108_v63  ;;  %v1172_v63 = vld [vmem:[%s2607_s6 + $0x370] sm:$0xff] }
 0x4f9   :  { %1598 = vmatprep.subr.mxu1 %v1123_v0 }
 0x4fa   :  { %1599 = vmatpush3.msra.mxu1 %v1107_v1  ;;  %v1155_v1 = vld [vmem:[%s2607_s6 + $0x2e8] sm:$0xff] }
 0x4fb   :  { %1600 = vmatprep.subr.mxu1 %v1122_v2  ;;  %v1187_v2 = vld [vmem:[%s2607_s6 + $0x3e8] sm:$0xff] }
 0x4fc   :  { %1601 = vmatpush3.msra.mxu1 %v1106_v3  ;;  %v1139_v3 = vld [vmem:[%s2607_s6 + $0x268] sm:$0xff] }
 0x4fd   :  { %1602 = vmatprep.subr.mxu1 %v1121_v4  ;;  %v1171_v4 = vld [vmem:[%s2607_s6 + $0x368] sm:$0xff] }
 0x4fe   :  { %1603 = vmatpush3.msra.mxu1 %v1105_v5  ;;  %v1154_v5 = vld [vmem:[%s2607_s6 + $0x2e0] sm:$0xff] }
 0x4ff   :  { %1604 = vmatprep.subr.mxu1 %v1120_v50  ;;  %v1186_v50 = vld [vmem:[%s2607_s6 + $0x3e0] sm:$0xff] }
 0x500   :  { %1605 = vmatpush3.msra.mxu1 %v1104_v6  ;;  %v1138_v6 = vld [vmem:[%s2607_s6 + $0x260] sm:$0xff] }
 0x501   :  { %1606 = vmatprep.subr.mxu1 %v1119_v7  ;;  %v1170_v7 = vld [vmem:[%s2607_s6 + $0x360] sm:$0xff] }
 0x502   :  { %1607 = vmatpush3.msra.mxu1 %v1103_v8  ;;  %v1153_v8 = vld [vmem:[%s2607_s6 + $0x2d8] sm:$0xff] }
 0x503   :  { %1608 = vmatprep.subr.mxu1 %v1118_v9  ;;  %v1185_v9 = vld [vmem:[%s2607_s6 + $0x3d8] sm:$0xff] }
 0x504   :  { %1609 = vmatpush3.msra.mxu1 %v1102_v10  ;;  %v1137_v10 = vld [vmem:[%s2607_s6 + $0x258] sm:$0xff] }
 0x505   :  { %1610 = vmatprep.subr.mxu1 %v1117_v11  ;;  %v1169_v11 = vld [vmem:[%s2607_s6 + $0x358] sm:$0xff] }
 0x506   :  { %1611 = vmatpush3.msra.mxu1 %v1101_v12  ;;  %v1152_v12 = vld [vmem:[%s2607_s6 + $0x2d0] sm:$0xff] }
 0x507   :  { %1612 = vmatprep.subr.mxu1 %v1116_v13  ;;  %v1184_v13 = vld [vmem:[%s2607_s6 + $0x3d0] sm:$0xff] }
 0x508   :  { %1613 = vmatpush3.msra.mxu1 %v1100_v14  ;;  %v1136_v14 = vld [vmem:[%s2607_s6 + $0x250] sm:$0xff] }
 0x509   :  { %1614 = vmatprep.subr.mxu1 %v1115_v15  ;;  %v1168_v15 = vld [vmem:[%s2607_s6 + $0x350] sm:$0xff] }
 0x50a   :  { %1615 = vmatpush3.msra.mxu1 %v1099_v16  ;;  %v1151_v16 = vld [vmem:[%s2607_s6 + $0x2c8] sm:$0xff] }
 0x50b   :  { %1616 = vmatprep.subr.mxu1 %v1114_v17  ;;  %v1183_v17 = vld [vmem:[%s2607_s6 + $0x3c8] sm:$0xff] }
 0x50c   :  { %1617 = vmatpush3.msra.mxu1 %v1098_v18  ;;  %v1135_v18 = vld [vmem:[%s2607_s6 + $0x248] sm:$0xff] }
 0x50d   :  { %1618 = vmatprep.subr.mxu1 %v1113_v20  ;;  %v1150_v20 = vld [vmem:[%s2607_s6 + $0x2c0] sm:$0xff] }
 0x50e   :  { %1619 = vmatpush3.msra.mxu1 %v1097_v22  ;;  %v1134_v22 = vld [vmem:[%s2607_s6 + $0x240] sm:$0xff] }
 0x50f   :  { %1620 = vmatprep.subr.mxu1 %v1112_v24  ;;  %v1149_v24 = vld [vmem:[%s2607_s6 + $0x2b8] sm:$0xff] }
 0x510   :  { %1621 = vmatpush3.msra.mxu1 %v1096_v26  ;;  %v1133_v26 = vld [vmem:[%s2607_s6 + $0x238] sm:$0xff] }
 0x511   :  { %1622 = vmatprep.subr.mxu1 %v1111_v28  ;;  %v1148_v28 = vld [vmem:[%s2607_s6 + $0x2b0] sm:$0xff] }
 0x512   :  { %1623 = vmatpush3.msra.mxu1 %v1095_v30  ;;  %v1132_v30 = vld [vmem:[%s2607_s6 + $0x230] sm:$0xff] }
 0x513   :  { %1624 = vmatprep.subr.mxu1 %v1110_v32  ;;  %v1147_v32 = vld [vmem:[%s2607_s6 + $0x2a8] sm:$0xff] }
 0x514   :  { %1625 = vmatpush3.msra.mxu1 %v1094_v34  ;;  %v1131_v34 = vld [vmem:[%s2607_s6 + $0x228] sm:$0xff] }
 0x515   :  { %1664 = vmatprep.subr.mxu1 %v1189_v36  ;;  %v1146_v36 = vld [vmem:[%s2607_s6 + $0x2a0] sm:$0xff] }
 0x5b5   :  { %v1808_v38 = vpop.f32.mrf.mxu1 }
 0x5b6   :  { %v2381_v39 = vadd.f32 %v1808_v38, %v1505_v37  ;;  %v1130_v38 = vld [vmem:[%s2607_s6 + $0x220] sm:$0xff] }
 0x5b7   :  { %v1020_v40 = vpop.f32.mrf.mxu1 }
 0x5b8   :  { %v2383_v41 = vadd.f32 %v1505_v37, %v1020_v40  ;;  %v1043_v42 = vrot.slane %v2381_v39, 2  ;;  %v1031_v43 = vrot.slane %v2381_v39, 7  ;;  %v1039_v47 = vrot.slane %v2381_v39, 1  ;;  %v1178_v37 = vld [vmem:[%s2607_s6 + $0x3a0] sm:$0xff] }
 0x5b9   :  { %v1051_v58 = vrot.slane %v2381_v39, 4  ;;  %v1059_v60 = vrot.slane %v2381_v39, 6  ;;  %v1162_v40 = vld [vmem:[%s2607_s6 + $0x320] sm:$0xff] }
 0x5ba   :  { %v1035_v44 = vrot.slane %v2383_v41, 1  ;;  %v1042_v45 = vrot.slane %v2383_v41, 3  ;;  %v1038_v46 = vrot.slane %v2383_v41, 2  ;;  %v1050_v48 = vrot.slane %v2383_v41, 5 }
 0x5bb   :  { %v1058_v55 = vrot.slane %v2383_v41, 7  ;;  %v1033_v56 = vsel %vm1032_vm3, %v1031_v43, %v2383_v41  ;;  %v1177_v43 = vld [vmem:[%s2607_s6 + $0x398] sm:$0xff] }
 0x5bc   :  { %v1036_v49 = vsel %vm1032_vm3, %v2381_v39, %v1035_v44  ;;  %v1044_v51 = vsel %vm1032_vm3, %v1043_v42, %v1042_v45  ;;  %v1040_v52 = vsel %vm1032_vm3, %v1039_v47, %v1038_v46  ;;  %v1052_v61 = vsel %vm1032_vm3, %v1051_v58, %v1050_v48  ;;  %v1145_v42 = vld [vmem:[%s2607_s6 + $0x298] sm:$0xff]  ;;  %v1144_v46 = vld [vmem:[%s2607_s6 + $0x290] sm:$0xff] }
 0x5bd   :  { %1261 = vmatprep.mubr.f32.mxu0 %v1036_v49  ;;  %1331 = vmatprep.mubr.f32.mxu1 %v1044_v51  ;;  %v1060_v0 = vsel %vm1032_vm3, %v1059_v60, %v1058_v55  ;;  %v1129_v44 = vld [vmem:[%s2607_s6 + $0x218] sm:$0xff]  ;;  %v1176_v47 = vld [vmem:[%s2607_s6 + $0x390] sm:$0xff]  ;;  %v1143_v51 = vld [vmem:[%s2607_s6 + $0x288] sm:$0xff]  ;;  %v1054_v58 = vrot.slane %v2383_v41, 6 }
 0x5be   :  { %1262 = vmatmul.mubr.f32.vlgmr.msra.gmra.mxu0 %v1033_v56  ;;  %1332 = vmatmul.mubr.f32.vlgmr.msra.gmra.mxu1 %v1040_v52  ;;  %v1161_v45 = vld [vmem:[%s2607_s6 + $0x318] sm:$0xff]  ;;  %v1128_v48 = vld [vmem:[%s2607_s6 + $0x210] sm:$0xff]  ;;  %v1175_v52 = vld [vmem:[%s2607_s6 + $0x388] sm:$0xff] }
 0x5bf   :  { %1630 = vmatpush3.msra.mxu0 %v1141_v53  ;;  %1665 = vmatpush3.msra.mxu1 %v1173_v54  ;;  %v1160_v49 = vld [vmem:[%s2607_s6 + $0x310] sm:$0xff]  ;;  %v1127_v53 = vld [vmem:[%s2607_s6 + $0x208] sm:$0xff]  ;;  %v1142_v55 = vld [vmem:[%s2607_s6 + $0x280] sm:$0xff] }
 0x5c0   :  { %1631 = vmatprep.subr.mxu0 %v1156_v57  ;;  %1401 = vmatprep.mubr.f32.mxu0 %v1052_v61  ;;  %v1159_v54 = vld [vmem:[%s2607_s6 + $0x308] sm:$0xff]  ;;  %v1174_v56 = vld [vmem:[%s2607_s6 + $0x380] sm:$0xff]  ;;  %v1046_v57 = vrot.slane %v2383_v41, 4  ;;  %v1047_v61 = vrot.slane %v2381_v39, 3 }
 0x5c1   :  { %1666 = vmatprep.subr.mxu1 %v1188_v59  ;;  %1471 = vmatprep.mubr.f32.mxu1 %v1060_v0  ;;  %v1126_v59 = vld [vmem:[%s2607_s6 + $0x200] sm:$0xff] }
 0x5c2   :  { %1632 = vmatpush3.msra.mxu0 %v1140_v62  ;;  %1667 = vmatpush3.msra.mxu1 %v1172_v63  ;;  %v1158_v60 = vld [vmem:[%s2607_s6 + $0x300] sm:$0xff]  ;;  %v1055_v62 = vrot.slane %v2381_v39, 5  ;;  %v1048_v41 = vsel %vm1032_vm3, %v1047_v61, %v1046_v57 }
 0x5c3   :  { %1633 = vmatprep.subr.mxu0 %v1155_v1  ;;  %1668 = vmatprep.subr.mxu1 %v1187_v2 }
 0x5c4   :  { %1634 = vmatpush3.msra.mxu0 %v1139_v3  ;;  %1669 = vmatpush3.msra.mxu1 %v1171_v4  ;;  %v1056_v63 = vsel %vm1032_vm3, %v1055_v62, %v1054_v58  ;;  %v1506_v4 = vld [vmem:[%s2608_s7] ss:$0 sm:$0xff] }
 0x5c5   :  { %1635 = vmatprep.subr.mxu0 %v1154_v5  ;;  %1670 = vmatprep.subr.mxu1 %v1186_v50 }
 0x5c6   :  { %1636 = vmatpush3.msra.mxu0 %v1138_v6  ;;  %1671 = vmatpush3.msra.mxu1 %v1170_v7 }
 0x5c7   :  { %1637 = vmatprep.subr.mxu0 %v1153_v8  ;;  %1672 = vmatprep.subr.mxu1 %v1185_v9 }
 0x5c8   :  { %1638 = vmatpush3.msra.mxu0 %v1137_v10  ;;  %1673 = vmatpush3.msra.mxu1 %v1169_v11 }
 0x5c9   :  { %1639 = vmatprep.subr.mxu0 %v1152_v12  ;;  %1674 = vmatprep.subr.mxu1 %v1184_v13 }
 0x5ca   :  { %1640 = vmatpush3.msra.mxu0 %v1136_v14  ;;  %1675 = vmatpush3.msra.mxu1 %v1168_v15 }
 0x5cb   :  { %1641 = vmatprep.subr.mxu0 %v1151_v16  ;;  %1676 = vmatprep.subr.mxu1 %v1183_v17 }
 0x5cc   :  { %1642 = vmatpush3.msra.mxu0 %v1135_v18  ;;  %1677 = vmatpush3.msra.mxu1 %v1167_v19 }
 0x5cd   :  { %1643 = vmatprep.subr.mxu0 %v1150_v20  ;;  %1678 = vmatprep.subr.mxu1 %v1182_v21 }
 0x5ce   :  { %1644 = vmatpush3.msra.mxu0 %v1134_v22  ;;  %1679 = vmatpush3.msra.mxu1 %v1166_v23 }
 0x5cf   :  { %1645 = vmatprep.subr.mxu0 %v1149_v24  ;;  %1680 = vmatprep.subr.mxu1 %v1181_v25 }
 0x5d0   :  { %1646 = vmatpush3.msra.mxu0 %v1133_v26  ;;  %1681 = vmatpush3.msra.mxu1 %v1165_v27 }
 0x5d1   :  { %1647 = vmatprep.subr.mxu0 %v1148_v28  ;;  %1682 = vmatprep.subr.mxu1 %v1180_v29 }
 0x5d2   :  { %1648 = vmatpush3.msra.mxu0 %v1132_v30  ;;  %1683 = vmatpush3.msra.mxu1 %v1164_v31 }
 0x5d3   :  { %1649 = vmatprep.subr.mxu0 %v1147_v32  ;;  %1684 = vmatprep.subr.mxu1 %v1179_v33 }
 0x5d4   :  { %1650 = vmatpush3.msra.mxu0 %v1131_v34  ;;  %1685 = vmatpush3.msra.mxu1 %v1163_v35 }
 0x5d5   :  { %1651 = vmatprep.subr.mxu0 %v1146_v36  ;;  %1686 = vmatprep.subr.mxu1 %v1178_v37 }
 0x5d6   :  { %1652 = vmatpush3.msra.mxu0 %v1130_v38  ;;  %1687 = vmatpush3.msra.mxu1 %v1162_v40 }
 0x5d7   :  { %1653 = vmatprep.subr.mxu0 %v1145_v42  ;;  %1688 = vmatprep.subr.mxu1 %v1177_v43 }
 0x5d8   :  { %1654 = vmatpush3.msra.mxu0 %v1129_v44  ;;  %1689 = vmatpush3.msra.mxu1 %v1161_v45 }
 0x5d9   :  { %1655 = vmatprep.subr.mxu0 %v1144_v46  ;;  %1690 = vmatprep.subr.mxu1 %v1176_v47 }
 0x5da   :  { %1656 = vmatpush3.msra.mxu0 %v1128_v48  ;;  %1691 = vmatpush3.msra.mxu1 %v1160_v49 }
 0x5db   :  { %1657 = vmatprep.subr.mxu0 %v1143_v51  ;;  %1692 = vmatprep.subr.mxu1 %v1175_v52 }
 0x5dc   :  { %1658 = vmatpush3.msra.mxu0 %v1127_v53  ;;  %1693 = vmatpush3.msra.mxu1 %v1159_v54 }
 0x5dd   :  { %1659 = vmatprep.subr.mxu0 %v1142_v55  ;;  %1694 = vmatprep.subr.mxu1 %v1174_v56 }
 0x5de   :  { %1660 = vmatpush3.msra.mxu0 %v1126_v59  ;;  %1695 = vmatpush3.msra.mxu1 %v1158_v60 }
 0x5df   :  { %1402 = vmatmul.mubr.f32.vlgmr.msra.gmra.mxu0 %v1048_v41  ;;  %1472 = vmatmul.mubr.f32.vlgmr.msra.gmra.mxu1 %v1056_v63 }
 0x67e   :  { %v1591_v0 = vpop.f32.mrf.mxu0  ;;  %v1626_v2 = vpop.f32.mrf.mxu1 }
 0x680   :  { %v1592_v1 = vpop.f32.mrf.mxu0  ;;  %v1627_v5 = vpop.f32.mrf.mxu1 }
 0x681   :  { %v1593_v3 = vadd.f32 %v1592_v1, %v1591_v0  ;;  %v1628_v7 = vadd.f32 %v1627_v5, %v1626_v2 }
 0x683   :  { %v1264_v39 = vadd.f32 %v1593_v3, %v1506_v4 }
 0x685   :  { %v1334_v10 = vadd.f32 %v1628_v7, %v1264_v39 }
 0x69f   :  { %v1661_v50 = vpop.f32.mrf.mxu0  ;;  %v1696_v6 = vpop.f32.mrf.mxu1 }
 0x6a1   :  { %v1662_v8 = vpop.f32.mrf.mxu0  ;;  %v1697_v9 = vpop.f32.mrf.mxu1 }
 0x6a2   :  { %v1663_v11 = vadd.f32 %v1662_v8, %v1661_v50  ;;  %v1698_v13 = vadd.f32 %v1697_v9, %v1696_v6 }
 0x6a4   :  { %v1404_v12 = vadd.f32 %v1663_v11, %v1334_v10 }
 0x6a6   :  { %v1474_v14 = vadd.f32 %v1698_v13, %v1404_v12 }
 0x6a8   :  { %1478 = vst.msk [vmem:[#allocation2] sm:$0x3] %vm1477_vm4, %v1474_v14 }
 0x6a9   :  { %1847 = shalt.err (!%p1844_p4)
}
 0x6aa   :  { %1488 = dma.vmem_to_hbm [thread:$0]  %s1486_s12, 32, %s2609_s8, [#allocation3]  }
 0x6ab   :  { %1856 = dma.done.wait [#allocation3], 32  }
 0x6ac   :  { %1857 = vsyncadd [#allocation3], 4294967264 }
 0x6ad   :  { %1492 = vsyncpa [#allocation3], 1 }

</bundles_post_ra>
